<compile_context>
chip_gen: v7x
topology: tpu7x:2x2x1
jax: 0.10.0
libtpu: 0.0.40
codegen_flags: <defaults>
</compile_context>

<pallas_src>
import jax
import jax.numpy as jnp
from jax import lax
from jax.experimental import pallas as pl
from jax.experimental.pallas import tpu as pltpu


def _choose_tiles(B, C, HW, itemsize, budget):
    """Pick (batch_tile, spatial_tile) that satisfy TPU block constraints."""
    # Spatial tile: a multiple of 128 that divides HW and keeps one (1, C, ts)
    # block under the budget; fall back to the full spatial extent.
    ts = HW
    if HW % 128 == 0:
        max_lanes = max(128, (budget // max(C * itemsize, 1)) // 128 * 128)
        ts = min(HW, max_lanes)
        while HW % ts != 0:
            ts -= 128
    # Batch tile: as many batch elements per step as the budget allows.  The
    # (bt, C) output block needs bt == B or bt % 8 == 0 (sublane constraint).
    bt = max(1, min(B, budget // max(C * ts * itemsize, 1)))
    if bt < B:
        bt = (bt // 8) * 8
        while bt >= 8 and B % bt != 0:
            bt -= 8
        if bt < 8:
            bt = B  # small batch: take the whole batch per step
    return bt, ts


def _make_kernel(inv_hw):
    def channel_attention_kernel(x_ref, w1t_ref, w2t_ref, o_ref,
                                 sum_acc, max_acc):
        """One (batch_tile, spatial_tile) block per grid step.

        x_ref   : VMEM (BT, C, TS)      input tile (any float dtype)
        w1t_ref : VMEM (C, hidden)      fc1 weight, transposed
        w2t_ref : VMEM (hidden, C)      fc2 weight, transposed
        o_ref   : VMEM (BT, C)          sigmoid(channel attention)
        sum_acc : VMEM (BT, C) f32      running spatial sum
        max_acc : VMEM (BT, C) f32      running spatial max
        """
        si = pl.program_id(1)

        @pl.when(si == 0)
        def _init():
            sum_acc[...] = jnp.zeros_like(sum_acc)
            max_acc[...] = jnp.full_like(max_acc, -jnp.inf)

        # Single fused pass over this spatial tile: load once, update both
        # the sum and the max accumulators (accumulate in f32).
        x = x_ref[...].astype(jnp.float32)                 # (BT, C, TS)
        sum_acc[...] += jnp.sum(x, axis=2)                 # (BT, C)
        max_acc[...] = jnp.maximum(max_acc[...], jnp.max(x, axis=2))

        @pl.when(si == pl.num_programs(1) - 1)
        def _finalize():
            w1t = w1t_ref[...].astype(jnp.float32)         # (C, hidden)
            w2t = w2t_ref[...].astype(jnp.float32)         # (hidden, C)
            avg = sum_acc[...] * inv_hw                    # true mean over H*W
            mx = max_acc[...]
            h_a = jnp.maximum(
                jnp.dot(avg, w1t, preferred_element_type=jnp.float32), 0.0)
            h_m = jnp.maximum(
                jnp.dot(mx, w1t, preferred_element_type=jnp.float32), 0.0)
            o = (jnp.dot(h_a, w2t, preferred_element_type=jnp.float32)
                 + jnp.dot(h_m, w2t, preferred_element_type=jnp.float32))
            o_ref[...] = jax.nn.sigmoid(o).astype(o_ref.dtype)

    return channel_attention_kernel


def channel_attention(x, fc1_w, fc2_w, *, vmem_block_budget_bytes=4 << 20):
    """x: (B, C, H, W). fc1_w: (C//16, C, 1, 1). fc2_w: (C, C//16, 1, 1).

    Returns sigmoid channel-attention weights of shape (B, C, 1, 1).
    """
    B, C, H, W = x.shape
    HW = H * W
    hidden = fc1_w.shape[0]

    x2 = x.reshape(B, C, HW)                                   # lane-dense view
    w1t = fc1_w.reshape(hidden, C).T.astype(jnp.float32)       # (C, hidden)
    w2t = fc2_w.reshape(C, hidden).T.astype(jnp.float32)       # (hidden, C)

    bt, ts = _choose_tiles(B, C, HW, x2.dtype.itemsize, vmem_block_budget_bytes)
    n_b = B // bt
    n_s = HW // ts

    kernel = _make_kernel(1.0 / float(HW))

    grid_spec = pltpu.PrefetchScalarGridSpec(
        num_scalar_prefetch=0,
        grid=(n_b, n_s),
        in_specs=[
            pl.BlockSpec((bt, C, ts), lambda bi, si: (bi, 0, si)),
            pl.BlockSpec((C, hidden), lambda bi, si: (0, 0)),
            pl.BlockSpec((hidden, C), lambda bi, si: (0, 0)),
        ],
        out_specs=pl.BlockSpec((bt, C), lambda bi, si: (bi, 0)),
        scratch_shapes=[
            pltpu.VMEM((bt, C), jnp.float32),   # running sum
            pltpu.VMEM((bt, C), jnp.float32),   # running max
        ],
    )

    out = pl.pallas_call(
        kernel,
        out_shape=jax.ShapeDtypeStruct((B, C), jnp.float32),
        grid_spec=grid_spec,
        compiler_params=pltpu.CompilerParams(
            dimension_semantics=("parallel", "arbitrary"),
            vmem_limit_bytes=32 * 1024 * 1024,
        ),
    )(x2, w1t, w2t)

    return out.reshape(B, C, 1, 1)


def channel_attention_ref(x, fc1_w, fc2_w):
    """Plain-JAX reference (mirrors the PyTorch forward)."""
    avg = jnp.mean(x, axis=(2, 3), keepdims=True)
    mx = jnp.max(x, axis=(2, 3), keepdims=True)

    def mlp(v):
        h = lax.conv_general_dilated(
            v, fc1_w, (1, 1), "VALID",
            dimension_numbers=("NCHW", "OIHW", "NCHW"))
        h = jnp.maximum(h, 0.0)
        return lax.conv_general_dilated(
            h, fc2_w, (1, 1), "VALID",
            dimension_numbers=("NCHW", "OIHW", "NCHW"))

    return jax.nn.sigmoid(mlp(avg) + mlp(mx))


if __name__ == "__main__":
    key = jax.random.PRNGKey(0)
    kx, k1, k2 = jax.random.split(key, 3)

    # in_planes must be >= 16 for the PyTorch module (it hard-codes //16).
    B, C, H, W = 2, 64, 16, 16
    hidden = C // 16

    x = jax.random.normal(kx, (B, C, H, W), dtype=jnp.float32)
    fc1_w = jax.random.normal(k1, (hidden, C, 1, 1), dtype=jnp.float32) * 0.1
    fc2_w = jax.random.normal(k2, (C, hidden, 1, 1), dtype=jnp.float32) * 0.1

    out = channel_attention(x, fc1_w, fc2_w)
    out = jax.block_until_ready(out)

    ref = channel_attention_ref(x, fc1_w, fc2_w)
    assert out.shape == (B, C, 1, 1)
    assert jnp.allclose(out, ref, atol=1e-5, rtol=1e-5), (
        float(jnp.max(jnp.abs(out - ref))))

    print("KERNEL_OK")
</pallas_src>

<mosaic_0001>
module attributes {stable_mosaic.version = 11 : i64} {
  func.func @channel_attention_kernel(%arg0: i32, %arg1: i32, %arg2: memref<2x64x256xf32, #tpu.memory_space<vmem>>, %arg3: memref<64x4xf32, #tpu.memory_space<vmem>>, %arg4: memref<4x64xf32, #tpu.memory_space<vmem>>, %arg5: memref<2x64xf32, #tpu.memory_space<vmem>>, %arg6: memref<2x64xf32, #tpu.memory_space<vmem>>, %arg7: memref<2x64xf32, #tpu.memory_space<vmem>>) attributes {dimension_semantics = [#tpu.dimension_semantics<parallel>, #tpu.dimension_semantics<arbitrary>], iteration_bounds = array<i64: 1, 1>, scalar_prefetch = 0 : i64, scratch_operands = 2 : i64, tpu.core_type = #tpu.core_type<tc>, window_params = [{transform_indices = @transform_0, window_bounds = array<i64: 2, 64, 256>}, {pipeline_mode = #tpu.pipeline_mode<synchronous>, transform_indices = @transform_1, window_bounds = array<i64: 64, 4>}, {pipeline_mode = #tpu.pipeline_mode<synchronous>, transform_indices = @transform_2, window_bounds = array<i64: 4, 64>}, {transform_indices = @transform_3, window_bounds = array<i64: 2, 64>}]} {
    %c0_i32 = arith.constant 0 : i32
    %0 = arith.cmpi eq, %arg1, %c0_i32 : i32
    %1 = arith.extui %0 : i1 to i32
    %c0_i32_0 = arith.constant 0 : i32
    %2 = arith.cmpi ne, %1, %c0_i32_0 : i32
    scf.if %2 {
      %cst_14 = arith.constant 0.000000e+00 : f32
      %15 = vector.broadcast %cst_14 : f32 to vector<2x64xf32>
      %c0_15 = arith.constant 0 : index
      %c0_16 = arith.constant 0 : index
      %16 = vector.load %arg6[%c0_15, %c0_16] : memref<2x64xf32, #tpu.memory_space<vmem>>, vector<2x64xf32>
      tpu.vector_store %arg6[%c0_15, %c0_16], %15 {strides = array<i32>} : memref<2x64xf32, #tpu.memory_space<vmem>>, vector<2x64xf32>,
      %cst_17 = arith.constant 0xFF800000 : f32
      %17 = vector.broadcast %cst_17 : f32 to vector<2x64xf32>
      %c0_18 = arith.constant 0 : index
      %c0_19 = arith.constant 0 : index
      %18 = vector.load %arg7[%c0_18, %c0_19] : memref<2x64xf32, #tpu.memory_space<vmem>>, vector<2x64xf32>
      tpu.vector_store %arg7[%c0_18, %c0_19], %17 {strides = array<i32>} : memref<2x64xf32, #tpu.memory_space<vmem>>, vector<2x64xf32>,
    } else {
    }
    %c0 = arith.constant 0 : index
    %c0_1 = arith.constant 0 : index
    %c0_2 = arith.constant 0 : index
    %3 = vector.load %arg2[%c0, %c0_1, %c0_2] : memref<2x64x256xf32, #tpu.memory_space<vmem>>, vector<2x64x256xf32>
    %c0_3 = arith.constant 0 : index
    %c0_4 = arith.constant 0 : index
    %4 = vector.load %arg6[%c0_3, %c0_4] : memref<2x64xf32, #tpu.memory_space<vmem>>, vector<2x64xf32>
    %cst = arith.constant dense<0.000000e+00> : vector<2x64xf32>
    %5 = vector.multi_reduction <add>, %3, %cst [2] : vector<2x64x256xf32> to vector<2x64xf32>
    %6 = arith.addf %4, %5 : vector<2x64xf32>
    %c0_5 = arith.constant 0 : index
    %c0_6 = arith.constant 0 : index
    %7 = vector.load %arg6[%c0_5, %c0_6] : memref<2x64xf32, #tpu.memory_space<vmem>>, vector<2x64xf32>
    tpu.vector_store %arg6[%c0_5, %c0_6], %6 {strides = array<i32>} : memref<2x64xf32, #tpu.memory_space<vmem>>, vector<2x64xf32>,
    %c0_7 = arith.constant 0 : index
    %c0_8 = arith.constant 0 : index
    %8 = vector.load %arg7[%c0_7, %c0_8] : memref<2x64xf32, #tpu.memory_space<vmem>>, vector<2x64xf32>
    %cst_9 = arith.constant dense<0xFF800000> : vector<2x64xf32>
    %9 = vector.multi_reduction <maximumf>, %3, %cst_9 [2] : vector<2x64x256xf32> to vector<2x64xf32>
    %10 = arith.maximumf %8, %9 : vector<2x64xf32>
    %c0_10 = arith.constant 0 : index
    %c0_11 = arith.constant 0 : index
    %11 = vector.load %arg7[%c0_10, %c0_11] : memref<2x64xf32, #tpu.memory_space<vmem>>, vector<2x64xf32>
    tpu.vector_store %arg7[%c0_10, %c0_11], %10 {strides = array<i32>} : memref<2x64xf32, #tpu.memory_space<vmem>>, vector<2x64xf32>,
    %c0_i32_12 = arith.constant 0 : i32
    %12 = arith.cmpi eq, %arg1, %c0_i32_12 : i32
    %13 = arith.extui %12 : i1 to i32
    %c0_i32_13 = arith.constant 0 : i32
    %14 = arith.cmpi ne, %13, %c0_i32_13 : i32
    scf.if %14 {
      %c0_14 = arith.constant 0 : index
      %c0_15 = arith.constant 0 : index
      %15 = vector.load %arg3[%c0_14, %c0_15] : memref<64x4xf32, #tpu.memory_space<vmem>>, vector<64x4xf32>
      %c0_16 = arith.constant 0 : index
      %c0_17 = arith.constant 0 : index
      %16 = vector.load %arg4[%c0_16, %c0_17] : memref<4x64xf32, #tpu.memory_space<vmem>>, vector<4x64xf32>
      %c0_18 = arith.constant 0 : index
      %c0_19 = arith.constant 0 : index
      %17 = vector.load %arg6[%c0_18, %c0_19] : memref<2x64xf32, #tpu.memory_space<vmem>>, vector<2x64xf32>
      %cst_20 = arith.constant 3.906250e-03 : f32
      %18 = vector.broadcast %cst_20 : f32 to vector<2x64xf32>
      %19 = arith.mulf %17, %18 : vector<2x64xf32>
      %c0_21 = arith.constant 0 : index
      %c0_22 = arith.constant 0 : index
      %20 = vector.load %arg7[%c0_21, %c0_22] : memref<2x64xf32, #tpu.memory_space<vmem>>, vector<2x64xf32>
      %cst_23 = arith.constant dense<0.000000e+00> : vector<2x4xf32>
      %21 = tpu.matmul %19, %15, %cst_23 {dimension_numbers = #tpu.dot_dimension_numbers<[1], [0], [0], [1], [0, 0, 1, 1], [], []>} : vector<2x64xf32>, vector<64x4xf32>, vector<2x4xf32> -> vector<2x4xf32>
      %cst_24 = arith.constant 0.000000e+00 : f32
      %22 = vector.broadcast %cst_24 : f32 to vector<2x4xf32>
      %23 = arith.maximumf %21, %22 : vector<2x4xf32>
      %cst_25 = arith.constant dense<0.000000e+00> : vector<2x4xf32>
      %24 = tpu.matmul %20, %15, %cst_25 {dimension_numbers = #tpu.dot_dimension_numbers<[1], [0], [0], [1], [0, 0, 1, 1], [], []>} : vector<2x64xf32>, vector<64x4xf32>, vector<2x4xf32> -> vector<2x4xf32>
      %cst_26 = arith.constant 0.000000e+00 : f32
      %25 = vector.broadcast %cst_26 : f32 to vector<2x4xf32>
      %26 = arith.maximumf %24, %25 : vector<2x4xf32>
      %cst_27 = arith.constant dense<0.000000e+00> : vector<2x64xf32>
      %27 = tpu.matmul %23, %16, %cst_27 {dimension_numbers = #tpu.dot_dimension_numbers<[1], [0], [0], [1], [0, 0, 1, 1], [], []>} : vector<2x4xf32>, vector<4x64xf32>, vector<2x64xf32> -> vector<2x64xf32>
      %cst_28 = arith.constant dense<0.000000e+00> : vector<2x64xf32>
      %28 = tpu.matmul %26, %16, %cst_28 {dimension_numbers = #tpu.dot_dimension_numbers<[1], [0], [0], [1], [0, 0, 1, 1], [], []>} : vector<2x4xf32>, vector<4x64xf32>, vector<2x64xf32> -> vector<2x64xf32>
      %29 = arith.addf %27, %28 : vector<2x64xf32>
      %30 = arith.negf %29 : vector<2x64xf32>
      %31 = math.exp %30 : vector<2x64xf32>
      %cst_29 = arith.constant 1.000000e+00 : f32
      %32 = vector.broadcast %cst_29 : f32 to vector<2x64xf32>
      %33 = arith.addf %32, %31 : vector<2x64xf32>
      %34 = arith.divf %32, %33 : vector<2x64xf32>
      %c0_30 = arith.constant 0 : index
      %c0_31 = arith.constant 0 : index
      %35 = vector.load %arg5[%c0_30, %c0_31] : memref<2x64xf32, #tpu.memory_space<vmem>>, vector<2x64xf32>
      tpu.vector_store %arg5[%c0_30, %c0_31], %34 {strides = array<i32>} : memref<2x64xf32, #tpu.memory_space<vmem>>, vector<2x64xf32>,
    } else {
    }
    return
  }
  func.func @transform_0(%arg0: i32, %arg1: i32) -> (i32, i32, i32) {
    %c0_i32 = arith.constant 0 : i32
    %c0_i32_0 = arith.constant 0 : i32
    return %arg0, %c0_i32, %arg1 : i32, i32, i32
  }
  func.func @transform_1(%arg0: i32, %arg1: i32) -> (i32, i32) {
    %c0_i32 = arith.constant 0 : i32
    %c0_i32_0 = arith.constant 0 : i32
    %c0_i32_1 = arith.constant 0 : i32
    return %c0_i32, %c0_i32_0 : i32, i32
  }
  func.func @transform_2(%arg0: i32, %arg1: i32) -> (i32, i32) {
    %c0_i32 = arith.constant 0 : i32
    %c0_i32_0 = arith.constant 0 : i32
    %c0_i32_1 = arith.constant 0 : i32
    return %c0_i32, %c0_i32_0 : i32, i32
  }
  func.func @transform_3(%arg0: i32, %arg1: i32) -> (i32, i32) {
    %c0_i32 = arith.constant 0 : i32
    %c0_i32_0 = arith.constant 0 : i32
    return %arg0, %c0_i32 : i32, i32
  }
}

</mosaic_0001>

<bundles_post_ra>
// kernel: tpu_custom_call.1
= control target key start
LH: loop header
LB: loop body
LE: loop exit
PB: predicated region body
PF: predicated region fallthrough
CT: control target
= control target key end

     0   :  { %8 = vsyncpa [#allocation5], 0  ;;  %s1076_s0 = inlined_call_operand.hbm [shape: f32[2,64,256], index: 0, kind: input, shape index: {}]   ;;  %s1077_s1 = inlined_call_operand.vmem [shape: f32[64,4], index: 1, kind: input, shape index: {}]   ;;  %s1078_s2 = inlined_call_operand.vmem [shape: f32[4,64], index: 2, kind: input, shape index: {}]   ;;  %s1079_s3 = inlined_call_operand.hbm [shape: f32[2,64], index: 3, kind: output, shape index: {}]  }
   0x1   :  { %9 = vsyncpa [#allocation6], 0  ;;  %s879_s12 = smov [#allocation4]   ;;  %s831_s16 = scalar_lea.hbm %s1076_s0, 4096 }
   0x2   :  { %s15_s13 = sshll.u32 %s879_s12, 4  ;;  %p832_p0 = scmp.ne.s32.totalorder %s1076_s0, %s831_s16  ;;  %s16_s13 = int_to_ptr.vmem [resolvable:$true] %s15_s13 }
   0x3   :  { %p835_p1 = scmp.lt.u32.totalorder %s831_s16, %s1076_s0 }
   0x5   :  { %p837_p2 = pnand %p835_p1, %p832_p0 }
   0x7   :  { %840 = shalt.err (!%p837_p2)
}
   0x8   :  { %s841_s21 = scalar_lea.vmem %s16_s13, 4096  ;;  %p846_p4 = scmp.lt.s32.totalorder %s16_s13, %s16_s13 }
   0x9   :  { %p842_p3 = scmp.ne.s32.totalorder %s16_s13, %s841_s21  ;;  %p847_p5 = scmp.lt.s32.totalorder %s841_s21, %s841_s21 }
   0xb   :  { %p848_p6 = por %p847_p5, %p846_p4 }
   0xd   :  { %p849_p7 = pnand %p848_p6, %p842_p3 }
   0xf   :  { %852 = shalt.err (!%p849_p7)
}
  0x10   :  { %s880_s22 = smov 256   ;;  %s881_s23 = smov 16  }
  0x11   :  { %21 = dma.hbm_to_vmem [thread:$0]  %s1076_s0, 4096, %s16_s13, [#allocation5], %s880_s22, %s880_s22, %s881_s23  }
  0x12   :  { %875 = dma.done.wait [#allocation5], 4096  }
  0x13   :  { %876 = vsyncadd [#allocation5], 4294963200  ;;  %v52_v0 = vld [vmem:[#allocation4 + $0x80] sm:$0xff]  ;;  %v53_v1 = vld [vmem:[#allocation4 + $0x88] sm:$0xff]  ;;  %vm33_vm0 = vcmask 517120   ;;  %vm885_vm1 = vmmov 0  }
  0x14   :  { %v36_v2 = vld [vmem:[#allocation4] sm:$0xff]  ;;  %v93_v3 = vadd.f32 %v53_v1, %v52_v0  ;;  %v37_v4 = vld [vmem:[#allocation4 + $0x8] sm:$0xff]  ;;  %v54_v5 = vld [vmem:[#allocation4 + $0x90] sm:$0xff]  ;;  %v258_v27 = vmax.f32 %v52_v0, %v53_v1  ;;  %v882_v0 = vmov 0.0   ;;  %vm144_vm2 = vcmask 130112  }
  0x15   :  { %v55_v6 = vld [vmem:[#allocation4 + $0x98] sm:$0xff]  ;;  %v69_v7 = vadd.f32 %v37_v4, %v36_v2  ;;  %v38_v8 = vld [vmem:[#allocation4 + $0x10] sm:$0xff]  ;;  %v56_v12 = vld [vmem:[#allocation4 + $0xa0] sm:$0xff]  ;;  %v234_v25 = vmax.f32 %v36_v2, %v37_v4  ;;  %34 = vst.msk [vmem:[#allocation2] sm:$0x3] %vm33_vm0, %v882_v0  ;;  %v883_v4 = vmov 0.0|0.0   ;;  %762 = vmatprep.mubr.msk.f32.mxu0 %vm885_vm1, %v882_v0  ;;  %781 = vmatprep.mubr.msk.f32.mxu1 %vm885_vm1, %v882_v0 }
  0x16   :  { %v39_v9 = vld [vmem:[#allocation4 + $0x18] sm:$0xff]  ;;  %94 = vadd.xlane.f32.xlu1 %v93_v3  ;;  %v96_v10 = vadd.f32 %v55_v6, %v54_v5  ;;  %v57_v13 = vld [vmem:[#allocation4 + $0xa8] sm:$0xff]  ;;  %v40_v14 = vld [vmem:[#allocation4 + $0x20] sm:$0xff]  ;;  %v261_v26 = vmax.f32 %v54_v5, %v55_v6  ;;  %794 = vmatprep.subr.bf16.mxu0 %v883_v4  ;;  %vm151_vm3 = vcmask 195712   ;;  %vm158_vm4 = vcmask 261312  }
  0x17   :  { %70 = vadd.xlane.f32.xlu0 %v69_v7  ;;  %v72_v11 = vadd.f32 %v39_v9, %v38_v8  ;;  %v41_v15 = vld [vmem:[#allocation4 + $0x28] sm:$0xff]  ;;  %v99_v16 = vadd.f32 %v57_v13, %v56_v12  ;;  %v58_v18 = vld [vmem:[#allocation4 + $0xb0] sm:$0xff]  ;;  %v59_v19 = vld [vmem:[#allocation4 + $0xb8] sm:$0xff]  ;;  %v237_v24 = vmax.f32 %v38_v8, %v39_v9  ;;  %v264_v34 = vmax.f32 %v56_v12, %v57_v13 }
  0x18   :  { %v75_v17 = vadd.f32 %v41_v15, %v40_v14  ;;  %v42_v20 = vld [vmem:[#allocation4 + $0x30] sm:$0xff]  ;;  %v43_v21 = vld [vmem:[#allocation4 + $0x38] sm:$0xff]  ;;  %v102_v22 = vadd.f32 %v59_v19, %v58_v18  ;;  %v60_v28 = vld [vmem:[#allocation4 + $0xc0] sm:$0xff]  ;;  %v240_v35 = vmax.f32 %v40_v14, %v41_v15  ;;  %v267_v42 = vmax.f32 %v58_v18, %v59_v19  ;;  %806 = vmatprep.subr.bf16.mxu1 %v883_v4 }
  0x19   :  { %v78_v23 = vadd.f32 %v43_v21, %v42_v20  ;;  %v61_v29 = vld [vmem:[#allocation4 + $0xc8] sm:$0xff]  ;;  %v44_v30 = vld [vmem:[#allocation4 + $0x40] sm:$0xff]  ;;  %v62_v36 = vld [vmem:[#allocation4 + $0xd0] sm:$0xff]  ;;  %v243_v43 = vmax.f32 %v42_v20, %v43_v21  ;;  %vm165_vm5 = vcmask 326912   ;;  %vm172_vm6 = vcmask 392512  }
  0x1a   :  { %97 = vadd.xlane.f32.xlu1 %v96_v10  ;;  %v45_v31 = vld [vmem:[#allocation4 + $0x48] sm:$0xff]  ;;  %v105_v32 = vadd.f32 %v61_v29, %v60_v28  ;;  %v63_v37 = vld [vmem:[#allocation4 + $0xd8] sm:$0xff]  ;;  %v46_v38 = vld [vmem:[#allocation4 + $0x50] sm:$0xff]  ;;  %v270_v50 = vmax.f32 %v60_v28, %v61_v29  ;;  %v133_v29 = vlaneseq  ;;  %vm179_vm7 = vcmask 458112  }
  0x1b   :  { %73 = vadd.xlane.f32.xlu0 %v72_v11  ;;  %v81_v33 = vadd.f32 %v45_v31, %v44_v30  ;;  %v47_v39 = vld [vmem:[#allocation4 + $0x58] sm:$0xff]  ;;  %v108_v40 = vadd.f32 %v63_v37, %v62_v36  ;;  %v64_v44 = vld [vmem:[#allocation4 + $0xe0] sm:$0xff]  ;;  %v65_v45 = vld [vmem:[#allocation4 + $0xe8] sm:$0xff]  ;;  %v246_v51 = vmax.f32 %v44_v30, %v45_v31  ;;  %v273_v58 = vmax.f32 %v62_v36, %v63_v37 }
  0x1c   :  { %v84_v41 = vadd.f32 %v47_v39, %v46_v38  ;;  %v48_v46 = vld [vmem:[#allocation4 + $0x60] sm:$0xff]  ;;  %v49_v47 = vld [vmem:[#allocation4 + $0x68] sm:$0xff]  ;;  %v111_v48 = vadd.f32 %v65_v45, %v64_v44  ;;  %v66_v52 = vld [vmem:[#allocation4 + $0xf0] sm:$0xff]  ;;  %v249_v59 = vmax.f32 %v46_v38, %v47_v39  ;;  %v276_v60 = vmax.f32 %v64_v44, %v65_v45 }
  0x1d   :  { %v87_v49 = vadd.f32 %v49_v47, %v48_v46  ;;  %v67_v53 = vld [vmem:[#allocation4 + $0xf8] sm:$0xff]  ;;  %v50_v54 = vld [vmem:[#allocation4 + $0x70] sm:$0xff]  ;;  %v252_v61 = vmax.f32 %v48_v46, %v49_v47  ;;  %v384_v2 = vld [vmem:[%s1077_s1 + $0x8] sm:$0xff]  ;;  %v884_v11 = vmov -inf   ;;  %v136_v37 = vshrl.u32 %v133_v29, 7 }
  0x1e   :  { %100 = vadd.xlane.f32.xlu1 %v99_v16  ;;  %v51_v55 = vld [vmem:[#allocation4 + $0x78] sm:$0xff]  ;;  %v114_v56 = vadd.f32 %v67_v53, %v66_v52  ;;  %v279_v62 = vmax.f32 %v66_v52, %v67_v53  ;;  %v385_v5 = vld [vmem:[%s1077_s1 + $0x10] sm:$0xff]  ;;  %v388_v9 = vld [vmem:[%s1077_s1 + $0x28] sm:$0xff]  ;;  %35 = vst.msk [vmem:[#allocation3] sm:$0x3] %vm33_vm0, %v884_v11  ;;  %vm186_vm8 = vcmask 523712  }
  0x1f   :  { %76 = vadd.xlane.f32.xlu0 %v75_v17  ;;  %v90_v57 = vadd.f32 %v51_v55, %v50_v54  ;;  %v255_v63 = vmax.f32 %v50_v54, %v51_v55  ;;  %v383_v1 = vld [vmem:[%s1077_s1] sm:$0xff]  ;;  %v386_v6 = vld [vmem:[%s1077_s1 + $0x18] sm:$0xff]  ;;  %v389_v12 = vld [vmem:[%s1077_s1 + $0x30] sm:$0xff]  ;;  %vm227_vm9 = vcmask 1041409   ;;  %vm395_vm10 = vcmask 523264  }
  0x20   :  { %v795_v3 = vpack.c.bf16 %v384_v2, %v383_v1  ;;  %v798_v7 = vpack.c.bf16 %v386_v6, %v385_v5  ;;  %v387_v8 = vld [vmem:[%s1077_s1 + $0x20] sm:$0xff]  ;;  %v390_v13 = vld [vmem:[%s1077_s1 + $0x38] sm:$0xff]  ;;  %vm548_vm11 = vcmask 1043456   ;;  %vm544_vm12 = vcmask 31744  }
  0x21   :  { %v801_v10 = vpack.c.bf16 %v388_v9, %v387_v8  ;;  %v804_v14 = vpack.c.bf16 %v390_v13, %v389_v12 }
  0x22   :  { %103 = vadd.xlane.f32.xlu1 %v102_v22  ;;  %796 = vmatpush3.bf16.msra.mxu0 %v795_v3 }
  0x23   :  { %79 = vadd.xlane.f32.xlu0 %v78_v23  ;;  %808 = vmatpush3.bf16.msra.mxu1 %v795_v3 }
  0x24   :  { %797 = vmatprep.subr.bf16.mxu0 %v883_v4  ;;  %809 = vmatprep.subr.bf16.mxu1 %v883_v4 }
  0x26   :  { %238 = vmax.xlane.f32.xlu1 %v237_v24  ;;  %799 = vmatpush3.bf16.msra.mxu0 %v798_v7 }
  0x27   :  { %235 = vmax.xlane.f32.xlu0 %v234_v25  ;;  %811 = vmatpush3.bf16.msra.mxu1 %v798_v7 }
  0x28   :  { %800 = vmatprep.subr.bf16.mxu0 %v883_v4  ;;  %812 = vmatprep.subr.bf16.mxu1 %v883_v4 }
  0x2a   :  { %262 = vmax.xlane.f32.xlu1 %v261_v26  ;;  %802 = vmatpush3.bf16.msra.mxu0 %v801_v10 }
  0x2b   :  { %259 = vmax.xlane.f32.xlu0 %v258_v27  ;;  %814 = vmatpush3.bf16.msra.mxu1 %v801_v10 }
  0x2c   :  { %803 = vmatprep.subr.bf16.mxu0 %v883_v4  ;;  %815 = vmatprep.subr.bf16.mxu1 %v883_v4 }
  0x2e   :  { %106 = vadd.xlane.f32.xlu1 %v105_v32  ;;  %805 = vmatpush3.bf16.msra.mxu0 %v804_v14  ;;  %v134_v32 = vand.u32 127, %v133_v29  ;;  %v68_v29 = vld [vmem:[#allocation2] sm:$0x3] }
  0x2f   :  { %82 = vadd.xlane.f32.xlu0 %v81_v33  ;;  %817 = vmatpush3.bf16.msra.mxu1 %v804_v14 }
  0x30   :  { %789 = vmatprep.subr.mxu0 %v882_v0  ;;  %784 = vmatprep.subr.mxu1 %v882_v0  ;;  %v146_v36 = vadd.s32 4294967280, %v134_v32  ;;  %v153_v38 = vadd.s32 4294967272, %v134_v32  ;;  %v160_v39 = vadd.s32 4294967264, %v134_v32  ;;  %v174_v45 = vadd.s32 4294967248, %v134_v32 }
  0x31   :  { %v972_v46 = vsub.s32 %v134_v32, %v136_v37  ;;  %v181_v53 = vadd.s32 4294967240, %v134_v32 }
  0x32   :  { %265 = vmax.xlane.f32.xlu1 %v264_v34  ;;  %v139_v34 = vadd.s32 4294967288, %v134_v32  ;;  %v970_v44 = vsub.s32 %v146_v36, %v136_v37  ;;  %v974_v47 = vsub.s32 %v153_v38, %v136_v37 }
  0x33   :  { %241 = vmax.xlane.f32.xlu0 %v240_v35  ;;  %v994_v5 = vsub.s32 %v181_v53, %v136_v37 }
  0x36   :  { %109 = vadd.xlane.f32.xlu1 %v108_v40 }
  0x37   :  { %85 = vadd.xlane.f32.xlu0 %v84_v41  ;;  %v966_v41 = vsub.s32 %v139_v34, %v136_v37 }
  0x3a   :  { %268 = vmax.xlane.f32.xlu1 %v267_v42  ;;  %v167_v42 = vadd.s32 4294967256, %v134_v32 }
  0x3b   :  { %244 = vmax.xlane.f32.xlu0 %v243_v43 }
  0x3e   :  { %112 = vadd.xlane.f32.xlu1 %v111_v48  ;;  %v976_v48 = vsub.s32 %v160_v39, %v136_v37 }
  0x3f   :  { %88 = vadd.xlane.f32.xlu0 %v87_v49 }
  0x42   :  { %271 = vmax.xlane.f32.xlu1 %v270_v50 }
  0x43   :  { %247 = vmax.xlane.f32.xlu0 %v246_v51  ;;  %v979_v51 = vsub.s32 %v167_v42, %v136_v37 }
  0x46   :  { %115 = vadd.xlane.f32.xlu1 %v114_v56  ;;  %v983_v56 = vsub.s32 %v174_v45, %v136_v37 }
  0x47   :  { %91 = vadd.xlane.f32.xlu0 %v90_v57 }
  0x4a   :  { %274 = vmax.xlane.f32.xlu1 %v273_v58 }
  0x4b   :  { %250 = vmax.xlane.f32.xlu0 %v249_v59 }
  0x4e   :  { %277 = vmax.xlane.f32.xlu1 %v276_v60 }
  0x4f   :  { %253 = vmax.xlane.f32.xlu0 %v252_v61 }
  0x52   :  { %280 = vmax.xlane.f32.xlu1 %v279_v62 }
  0x53   :  { %256 = vmax.xlane.f32.xlu0 %v255_v63 }
  0xa3   :  { %v95_v15 = vpop.xlane.xlu1 %94 }
  0xa4   :  { %v71_v16 = vpop.xlane.xlu0 %70  ;;  %v191_v57 = vrot.slane %v95_v15, %v972_v46 }
  0xa5   :  { %v138_v60 = vrot.slane %v71_v16, %v972_v46 }
  0xa7   :  { %v98_v17 = vpop.xlane.xlu1 %97 }
  0xa8   :  { %v74_v18 = vpop.xlane.xlu0 %73  ;;  %v195_v50 = vrot.slane %v98_v17, %v966_v41 }
  0xa9   :  { %v143_v54 = vrot.slane %v74_v18, %v966_v41 }
  0xaa   :  { %v196_v1 = vsel %vm144_vm2, %v195_v50, %v191_v57 }
  0xab   :  { %v101_v19 = vpop.xlane.xlu1 %100  ;;  %v145_v6 = vsel %vm144_vm2, %v143_v54, %v138_v60 }
  0xac   :  { %v77_v20 = vpop.xlane.xlu0 %76  ;;  %v200_v55 = vrot.slane %v101_v19, %v970_v44 }
  0xad   :  { %v150_v58 = vrot.slane %v77_v20, %v970_v44 }
  0xae   :  { %v201_v7 = vsel %vm151_vm3, %v200_v55, %v196_v1  ;;  %v233_v1 = vld [vmem:[#allocation3] sm:$0x3] }
  0xaf   :  { %v104_v21 = vpop.xlane.xlu1 %103  ;;  %v152_v10 = vsel %vm151_vm3, %v150_v58, %v145_v6 }
  0xb0   :  { %v80_v22 = vpop.xlane.xlu0 %79  ;;  %v205_v59 = vrot.slane %v104_v21, %v974_v47 }
  0xb1   :  { %v157_v61 = vrot.slane %v80_v22, %v974_v47 }
  0xb2   :  { %v206_v11 = vsel %vm158_vm4, %v205_v59, %v201_v7 }
  0xb3   :  { %v952_v23 = vpop.xlane.xlu1 %238  ;;  %v159_v13 = vsel %vm158_vm4, %v157_v61, %v152_v10 }
  0xb4   :  { %v954_v24 = vpop.xlane.xlu0 %235  ;;  %v305_v38 = vrot.slane %v952_v23, %v966_v41 }
  0xb5   :  { %v301_v39 = vrot.slane %v954_v24, %v972_v46 }
  0xb7   :  { %v956_v25 = vpop.xlane.xlu1 %262 }
  0xb8   :  { %v958_v26 = vpop.xlane.xlu0 %259  ;;  %v344_v34 = vrot.slane %v956_v25, %v966_v41 }
  0xbb   :  { %v107_v27 = vpop.xlane.xlu1 %106 }
  0xbc   :  { %v83_v28 = vpop.xlane.xlu0 %82  ;;  %v210_v62 = vrot.slane %v107_v27, %v976_v48 }
  0xbd   :  { %v164_v2 = vrot.slane %v83_v28, %v976_v48 }
  0xbe   :  { %v211_v14 = vsel %vm165_vm5, %v210_v62, %v206_v11 }
  0xbf   :  { %v960_v30 = vpop.xlane.xlu1 %265  ;;  %v166_v16 = vsel %vm165_vm5, %v164_v2, %v159_v13 }
  0xc0   :  { %v962_v31 = vpop.xlane.xlu0 %241  ;;  %v349_v42 = vrot.slane %v960_v30, %v970_v44 }
  0xc3   :  { %v110_v33 = vpop.xlane.xlu1 %109 }
  0xc4   :  { %v86_v35 = vpop.xlane.xlu0 %85  ;;  %v215_v3 = vrot.slane %v110_v33, %v979_v51 }
  0xc5   :  { %v171_v8 = vrot.slane %v86_v35, %v979_v51  ;;  %v340_v35 = vrot.slane %v958_v26, %v972_v46 }
  0xc6   :  { %v216_v17 = vsel %vm172_vm6, %v215_v3, %v211_v14 }
  0xc7   :  { %v964_v40 = vpop.xlane.xlu1 %268  ;;  %v173_v20 = vsel %vm172_vm6, %v171_v8, %v166_v16  ;;  %v345_v24 = vsel %vm144_vm2, %v344_v34, %v340_v35  ;;  %v391_v8 = vld [vmem:[%s1078_s2] sm:$0xf]  ;;  %s886_s2 = smov [#allocation7]  }
  0xc8   :  { %v968_v43 = vpop.xlane.xlu0 %244  ;;  %v354_v25 = vrot.slane %v964_v40, %v974_v47  ;;  %s708_s15 = sshll.u32 %s886_s2, 4  ;;  %s709_s15 = int_to_ptr.vmem [resolvable:$true] %s708_s15 }
  0xc9   :  { %v315_v26 = vrot.slane %v968_v43, %v974_v47  ;;  %s853_s16 = scalar_lea.vmem %s709_s15, 32  ;;  %p858_p9 = scmp.lt.s32.totalorder %s709_s15, %s709_s15 }
  0xca   :  { %p854_p8 = scmp.ne.s32.totalorder %s709_s15, %s853_s16  ;;  %p859_p10 = scmp.lt.s32.totalorder %s853_s16, %s853_s16 }
  0xcb   :  { %v113_v49 = vpop.xlane.xlu1 %112 }
  0xcc   :  { %v89_v52 = vpop.xlane.xlu0 %88  ;;  %v220_v9 = vrot.slane %v113_v49, %v983_v56  ;;  %v310_v49 = vrot.slane %v962_v31, %v970_v44  ;;  %v306_v31 = vsel %vm144_vm2, %v305_v38, %v301_v39  ;;  %v350_v44 = vsel %vm151_vm3, %v349_v42, %v345_v24  ;;  %p860_p11 = por %p859_p10, %p858_p9 }
  0xcd   :  { %v178_v12 = vrot.slane %v89_v52, %v983_v56  ;;  %v355_v52 = vsel %vm158_vm4, %v354_v25, %v350_v44 }
  0xce   :  { %v221_v21 = vsel %vm179_vm7, %v220_v9, %v216_v17  ;;  %v311_v47 = vsel %vm151_vm3, %v310_v49, %v306_v31  ;;  %p861_p12 = pnand %p860_p11, %p854_p8 }
  0xcf   :  { %v272_v63 = vpop.xlane.xlu1 %271  ;;  %v180_v27 = vsel %vm179_vm7, %v178_v12, %v173_v20  ;;  %v316_v54 = vsel %vm158_vm4, %v315_v26, %v311_v47 }
  0xd0   :  { %v248_v4 = vpop.xlane.xlu0 %247  ;;  %v359_v50 = vrot.slane %v272_v63, %v976_v48 }
  0xd1   :  { %v320_v41 = vrot.slane %v248_v4, %v976_v48 }
  0xd2   :  { %v360_v48 = vsel %vm165_vm5, %v359_v50, %v355_v52 }
  0xd3   :  { %v116_v15 = vpop.xlane.xlu1 %115  ;;  %v321_v57 = vsel %vm165_vm5, %v320_v41, %v316_v54 }
  0xd4   :  { %v225_v18 = vrot.slane %v116_v15, %v994_v5  ;;  %v92_v19 = vpop.xlane.xlu0 %91 }
  0xd5   :  { %v185_v22 = vrot.slane %v92_v19, %v994_v5 }
  0xd6   :  { %v226_v28 = vsel %vm186_vm8, %v225_v18, %v221_v21 }
  0xd7   :  { %v187_v32 = vsel %vm186_vm8, %v185_v22, %v180_v27  ;;  %v275_v33 = vpop.xlane.xlu1 %274 }
  0xd8   :  { %v228_v36 = vsel %vm227_vm9, %v226_v28, %v187_v32  ;;  %v251_v37 = vpop.xlane.xlu0 %250  ;;  %v364_v30 = vrot.slane %v275_v33, %v979_v51 }
  0xd9   :  { %v230_v45 = vadd.f32 %v228_v36, %v68_v29  ;;  %v325_v40 = vrot.slane %v251_v37, %v979_v51 }
  0xda   :  { %v365_v58 = vsel %vm172_vm6, %v364_v30, %v360_v48 }
  0xdb   :  { %232 = vst.msk [vmem:[#allocation2] sm:$0x3] %vm33_vm0, %v230_v45  ;;  %v278_v23 = vpop.xlane.xlu1 %277  ;;  %v326_v60 = vsel %vm172_vm6, %v325_v40, %v321_v57 }
  0xdc   :  { %v254_v46 = vpop.xlane.xlu0 %253  ;;  %v369_v43 = vrot.slane %v278_v23, %v983_v56 }
  0xdd   :  { %v330_v53 = vrot.slane %v254_v46, %v983_v56 }
  0xde   :  { %v370_v61 = vsel %vm179_vm7, %v369_v43, %v365_v58 }
  0xdf   :  { %v281_v55 = vpop.xlane.xlu1 %280  ;;  %v331_v56 = vsel %vm179_vm7, %v330_v53, %v326_v60 }
  0xe0   :  { %v374_v59 = vrot.slane %v281_v55, %v994_v5  ;;  %v257_v51 = vpop.xlane.xlu0 %256 }
  0xe1   :  { %v335_v62 = vrot.slane %v257_v51, %v994_v5 }
  0xe2   :  { %v375_v63 = vsel %vm186_vm8, %v374_v59, %v370_v61  ;;  %v392_v2 = vld [vmem:[#allocation2] sm:$0x3] }
  0xe3   :  { %v336_v3 = vsel %vm186_vm8, %v335_v62, %v331_v56  ;;  %v393_v4 = vmul.f32 0.00390625, %v392_v2 }
  0xe4   :  { %v376_v6 = vsel %vm227_vm9, %v375_v63, %v336_v3 }
  0xe5   :  { %v378_v7 = vmax.f32 %v233_v1, %v376_v6  ;;  %763 = vmatmul.mubr.msk.f32.vlgmr.msra.gmra.mrb[0].mxu0 %vm395_vm10, %v393_v4 }
  0xe6   :  { %791 = vmatprep.mubr.msk.f32.mxu0 %vm885_vm1, %v882_v0  ;;  %790 = vmatpush3.msk.msra.mxu0 %vm548_vm11, %v391_v8 }
  0xe7   :  { %379 = vst.msk [vmem:[#allocation3] sm:$0x3] %vm33_vm0, %v378_v7 }
  0xee   :  { %v394_v5 = vld [vmem:[#allocation3] sm:$0x3] }
  0xef   :  { %782 = vmatmul.mubr.msk.f32.vlgmr.msra.gmra.mrb[0].mxu1 %vm395_vm10, %v394_v5 }
  0xf0   :  { %786 = vmatprep.mubr.msk.f32.mxu1 %vm885_vm1, %v882_v0  ;;  %785 = vmatpush3.msk.msra.mxu1 %vm548_vm11, %v391_v8 }
 0x1b8   :  { %v465_v9 = vpop.f32.mrb[0].mxu0 }
 0x1b9   :  { %v469_v10 = vmax.f32 %v465_v9, 0.0  ;;  %v764_v11 = vpop.f32.mrb[1].mxu0 }
 0x1bb   :  { %792 = vmatmul.mubr.msk.f32.vlgmr.msra.gmra.mrb[2].mxu0 %vm544_vm12, %v469_v10 }
 0x1c2   :  { %v539_v12 = vpop.f32.mrb[0].mxu1 }
 0x1c3   :  { %v543_v13 = vmax.f32 %v539_v12, 0.0  ;;  %v783_v14 = vpop.f32.mrb[1].mxu1 }
 0x1c5   :  { %787 = vmatmul.mubr.msk.f32.vlgmr.msra.gmra.mrb[2].mxu1 %vm544_vm12, %v543_v13 }
 0x28e   :  { %v691_v15 = vpop.f32.mrb[2].mxu0 }
 0x28f   :  { %v793_v16 = vpop.f32.mrb[3].mxu0 }
 0x298   :  { %v618_v17 = vpop.f32.mrb[2].mxu1 }
 0x299   :  { %v692_v0 = vadd.f32 %v691_v15, %v618_v17  ;;  %v788_v18 = vpop.f32.mrb[3].mxu1 }
 0x29b   :  { %v723_v19 = vmul.f32 -1.442695, %v692_v0 }
 0x29d   :  { %827 = vpow2.f32 %v723_v19 }
 0x2a7   :  { %v828_v20 = vpop.eup %827 }
 0x2a8   :  { %v698_v21 = vadd.f32 1.0, %v828_v20 }
 0x2aa   :  { %829 = vrcp.f32 %v698_v21 }
 0x2b4   :  { %v830_v22 = vpop.eup %829 }
 0x2b5   :  { %701 = vst.msk [vmem:[#allocation7] sm:$0x3] %vm33_vm0, %v830_v22 }
 0x2b6   :  { %864 = shalt.err (!%p861_p12)
}
 0x2b7   :  { %s865_s19 = scalar_lea.hbm %s1079_s3, 32 }
 0x2b8   :  { %p866_p13 = scmp.ne.s32.totalorder %s1079_s3, %s865_s19  ;;  %p869_p0 = scmp.lt.u32.totalorder %s865_s19, %s1079_s3 }
 0x2ba   :  { %p871_p1 = pnand %p869_p0, %p866_p13 }
 0x2bc   :  { %874 = shalt.err (!%p871_p1)
}
 0x2bd   :  { %711 = dma.vmem_to_hbm [thread:$0]  %s709_s15, 32, %s1079_s3, [#allocation6]  }
 0x2be   :  { %877 = dma.done.wait [#allocation6], 32  }
 0x2bf   :  { %878 = vsyncadd [#allocation6], 4294967264 }
 0x2c0   :  { %715 = vsyncpa [#allocation5], 1 }
 0x2c1   :  { %716 = vsyncpa [#allocation6], 1 }

</bundles_post_ra>
